<compile_context>
chip_gen: v5e
topology: v5e:2x2
jax: 0.10.0
libtpu: 0.0.40
codegen_flags: <defaults>
</compile_context>

<pallas_src>
import math
import functools

import jax
import jax.numpy as jnp
from jax import lax
from jax.experimental import pallas as pl
from jax.experimental.pallas import tpu as pltpu

ALPHA = 0.5
GAMMA = 1.5
BETA = 1.0                                   # forward() always uses beta=1.0
B_CONST = math.e ** (GAMMA / ALPHA) - 1.0    # np.e ** (gamma/alpha) - 1

LANES = 128
MAX_SINGLE_ROWS = 2048     # single-call path up to (2048,128) f32 = 1 MiB / input
TILE_ROWS = 2048           # streaming tile: 1 MiB f32 per input, safe on v5e/v6e/v7x
NCORES = 2                 # leading "parallel" grid axis (both TensorCores on v7x)
# TODO(synk): make TILE_ROWS / buffering generation-aware (4096-8192 rows and
# pl.Buffered(3) on v7x, cap at 4096 on v5e) via pltpu.get_tpu_info() after a
# hardware sweep; 2048 rows is within every generation's default scoped VMEM.


def _loss_tile(x, t):
    """Elementwise RetinaMask smooth-L1 (alpha=0.5, gamma=1.5, beta=1), f32."""
    diff = jnp.abs(x.astype(jnp.float32) - t.astype(jnp.float32))
    u = B_CONST * diff + 1.0          # shared: (b*diff + 1) == (b*diff/beta + 1)
    small = (ALPHA / B_CONST) * u * jnp.log(u) - ALPHA * diff
    large = GAMMA * diff + (GAMMA / B_CONST - ALPHA * BETA)
    return jnp.where(diff < BETA, small, large)


def _single_block_kernel(x_ref, t_ref, out_ref):
    # Whole array in one block: no grid, no accumulator, no init/finalize.
    loss = _loss_tile(x_ref[...], t_ref[...])
    out_ref[...] = jnp.sum(loss, axis=0, keepdims=True)   # lane-dense (1,128)


def _tiled_kernel(x_ref, t_ref, out_ref, acc_ref, *, rows, tile_rows,
                  steps_per_core):
    core = pl.program_id(0)
    step = pl.program_id(1)

    @pl.when(step == 0)
    def _():
        acc_ref[...] = jnp.zeros_like(acc_ref)

    # Valid rows of this logical tile; <= 0 for fully-masked trailing tiles
    # (their block index is clamped in the index_map, data is masked here).
    blk = core * steps_per_core + step
    valid = rows - blk * tile_rows

    loss = _loss_tile(x_ref[...], t_ref[...])
    row_idx = lax.broadcasted_iota(jnp.int32, (tile_rows, LANES), 0)
    loss = jnp.where(row_idx < valid, loss, 0.0)   # never trust OOB VMEM data

    # Deferred reduction into a tiny (1,128) accumulator: per-step sublane
    # reduce + one add, no full-tile read-modify-write of a big scratch.
    acc_ref[...] += jnp.sum(loss, axis=0, keepdims=True)

    @pl.when(step == pl.num_programs(1) - 1)
    def _():
        out_ref[...] = acc_ref[...].reshape(1, 1, LANES)


@functools.partial(jax.jit, static_argnames=("size_average",))
def smooth_l1_loss_pallas(input_, target, size_average=True):
    assert input_.shape == target.shape
    n_elems = input_.size

    # Flatten in the NATIVE dtype; casting happens inside the kernel.
    x_flat = input_.reshape(-1)
    t_flat = target.reshape(-1)

    rows = n_elems // LANES
    main = rows * LANES

    total = jnp.float32(0.0)
    if main:
        x2 = x_flat[:main].reshape(rows, LANES)
        t2 = t_flat[:main].reshape(rows, LANES)
        bytes_in = main * (x2.dtype.itemsize + t2.dtype.itemsize)

        if rows <= MAX_SINGLE_ROWS:
            # Fast path: single invocation, full-array blocks in VMEM.
            partial = pl.pallas_call(
                _single_block_kernel,
                out_shape=jax.ShapeDtypeStruct((1, LANES), jnp.float32),
                cost_estimate=pl.CostEstimate(
                    flops=12 * main, transcendentals=main,
                    bytes_accessed=bytes_in + 4 * LANES),
            )(x2, t2)
        else:
            # Streaming path: big fixed tiles + ragged-tile masking, two-core
            # parallel axis, tiny VMEM accumulator.
            tile_rows = TILE_ROWS
            total_steps = pl.cdiv(rows, tile_rows)
            steps_per_core = pl.cdiv(total_steps, NCORES)
            last_block = total_steps - 1

            def in_map(c, i):
                # Clamp so fully-masked trailing tiles re-use the last valid
                # block (revisit -> no extra DMA) instead of running off HBM.
                return (jnp.minimum(c * steps_per_core + i, last_block), 0)

            kernel = functools.partial(
                _tiled_kernel, rows=rows, tile_rows=tile_rows,
                steps_per_core=steps_per_core)

            partial = pl.pallas_call(
                kernel,
                out_shape=jax.ShapeDtypeStruct((NCORES, 1, LANES), jnp.float32),
                grid_spec=pltpu.PrefetchScalarGridSpec(
                    num_scalar_prefetch=0,
                    grid=(NCORES, steps_per_core),
                    in_specs=[
                        pl.BlockSpec((tile_rows, LANES), in_map),
                        pl.BlockSpec((tile_rows, LANES), in_map),
                    ],
                    out_specs=pl.BlockSpec((1, 1, LANES),
                                           lambda c, i: (c, 0, 0)),
                    scratch_shapes=[pltpu.VMEM((1, LANES), jnp.float32)],
                ),
                compiler_params=pltpu.CompilerParams(
                    dimension_semantics=("parallel", "arbitrary")),
                cost_estimate=pl.CostEstimate(
                    flops=12 * main, transcendentals=main,
                    bytes_accessed=bytes_in + NCORES * 4 * LANES),
            )(x2, t2)

        total = jnp.sum(partial)          # final 128/256-way reduce in wrapper

    tail = n_elems - main
    if tail:
        # Ragged tail (< 128 elements): negligible, computed in plain JAX so
        # we never materialize padded HBM copies of the whole input.
        total = total + jnp.sum(_loss_tile(x_flat[main:], t_flat[main:]))

    if size_average:
        return total / jnp.float32(n_elems)
    return total


def _reference_jax(input_, target, size_average=True):
    x = input_.astype(jnp.float32)
    t = target.astype(jnp.float32)
    diff = jnp.abs(x - t)
    cond = diff < BETA
    small = (ALPHA / B_CONST) * (B_CONST * diff + 1.0) * jnp.log(
        B_CONST * diff / BETA + 1.0) - ALPHA * diff
    large = GAMMA * diff + (GAMMA / B_CONST) - ALPHA * BETA
    loss = jnp.where(cond, small, large)
    return loss.mean() if size_average else loss.sum()


if __name__ == "__main__":
    key = jax.random.PRNGKey(0)
    k1, k2, k3, k4, k5, k6 = jax.random.split(key, 6)

    # Primary: NCHW (2,4,16,16) -> 2048 elements -> single-block fast path.
    shape = (2, 4, 16, 16)
    x = jax.random.normal(k1, shape, dtype=jnp.float32) * 2.0
    t = jax.random.normal(k2, shape, dtype=jnp.float32) * 2.0

    out_mean = jax.block_until_ready(smooth_l1_loss_pallas(x, t, size_average=True))
    out_sum = jax.block_until_ready(smooth_l1_loss_pallas(x, t, size_average=False))
    ref_mean = _reference_jax(x, t, True)
    ref_sum = _reference_jax(x, t, False)
    assert jnp.allclose(out_mean, ref_mean, rtol=1e-5, atol=1e-5), (out_mean, ref_mean)
    assert jnp.allclose(out_sum, ref_sum, rtol=1e-5, atol=1e-3), (out_sum, ref_sum)

    # bf16 inputs: exercises the in-kernel f32 cast (no wrapper astype copies).
    xb16 = x.astype(jnp.bfloat16)
    tb16 = t.astype(jnp.bfloat16)
    out_b16 = jax.block_until_ready(smooth_l1_loss_pallas(xb16, tb16, True))
    ref_b16 = _reference_jax(xb16, tb16, True)
    assert jnp.allclose(out_b16, ref_b16, rtol=1e-5, atol=1e-5), (out_b16, ref_b16)

    # Odd size (1155 elements = 9 rows + 3-element tail): no full-array padding.
    shape_odd = (3, 5, 7, 11)
    xo = jax.random.normal(k3, shape_odd, dtype=jnp.float32) * 2.0
    to = jax.random.normal(k4, shape_odd, dtype=jnp.float32) * 2.0
    out_odd = jax.block_until_ready(smooth_l1_loss_pallas(xo, to, True))
    ref_odd = _reference_jax(xo, to, True)
    assert jnp.allclose(out_odd, ref_odd, rtol=1e-5, atol=1e-5), (out_odd, ref_odd)

    # Larger input exercising the tiled path: 655360 elems = 5120 rows
    # -> total_steps=3, grid=(2,2): core 0 accumulates 2 tiles, core 1 gets one
    # real tile plus one clamped fully-masked tile.
    shape_big = (8, 16, 64, 80)
    xg = jax.random.normal(k5, shape_big, dtype=jnp.float32) * 2.0
    tg = jax.random.normal(k6, shape_big, dtype=jnp.float32) * 2.0
    out_big = jax.block_until_ready(smooth_l1_loss_pallas(xg, tg, True))
    ref_big = _reference_jax(xg, tg, True)
    assert jnp.allclose(out_big, ref_big, rtol=1e-4, atol=1e-5), (out_big, ref_big)

    print("KERNEL_OK")
</pallas_src>

<mosaic_0001>
module attributes {stable_mosaic.version = 11 : i64} {
  func.func @_single_block_kernel(%arg0: memref<16x128xf32, #tpu.memory_space<vmem>>, %arg1: memref<16x128xf32, #tpu.memory_space<vmem>>, %arg2: memref<1x128xf32, #tpu.memory_space<vmem>>) attributes {dimension_semantics = [], scalar_prefetch = 0 : i64, scratch_operands = 0 : i64, tpu.core_type = #tpu.core_type<tc>} {
    %c0 = arith.constant 0 : index
    %c0_0 = arith.constant 0 : index
    %0 = vector.load %arg0[%c0, %c0_0] : memref<16x128xf32, #tpu.memory_space<vmem>>, vector<16x128xf32>
    %c0_1 = arith.constant 0 : index
    %c0_2 = arith.constant 0 : index
    %1 = vector.load %arg1[%c0_1, %c0_2] : memref<16x128xf32, #tpu.memory_space<vmem>>, vector<16x128xf32>
    %2 = arith.subf %0, %1 : vector<16x128xf32>
    %3 = math.absf %2 : vector<16x128xf32>
    %cst = arith.constant 19.085537 : f32
    %4 = vector.broadcast %cst : f32 to vector<16x128xf32>
    %5 = arith.mulf %4, %3 : vector<16x128xf32>
    %cst_3 = arith.constant 1.000000e+00 : f32
    %6 = vector.broadcast %cst_3 : f32 to vector<16x128xf32>
    %7 = arith.addf %5, %6 : vector<16x128xf32>
    %cst_4 = arith.constant 0.0261978488 : f32
    %8 = vector.broadcast %cst_4 : f32 to vector<16x128xf32>
    %9 = arith.mulf %8, %7 : vector<16x128xf32>
    %10 = math.log %7 : vector<16x128xf32>
    %11 = arith.mulf %9, %10 : vector<16x128xf32>
    %cst_5 = arith.constant 5.000000e-01 : f32
    %12 = vector.broadcast %cst_5 : f32 to vector<16x128xf32>
    %13 = arith.mulf %12, %3 : vector<16x128xf32>
    %14 = arith.subf %11, %13 : vector<16x128xf32>
    %cst_6 = arith.constant 1.500000e+00 : f32
    %15 = vector.broadcast %cst_6 : f32 to vector<16x128xf32>
    %16 = arith.mulf %15, %3 : vector<16x128xf32>
    %cst_7 = arith.constant -0.421406448 : f32
    %17 = vector.broadcast %cst_7 : f32 to vector<16x128xf32>
    %18 = arith.addf %16, %17 : vector<16x128xf32>
    %cst_8 = arith.constant 1.000000e+00 : f32
    %19 = vector.broadcast %cst_8 : f32 to vector<16x128xf32>
    %20 = arith.cmpf olt, %3, %19 : vector<16x128xf32>
    %21 = arith.select %20, %14, %18 : vector<16x128xi1>, vector<16x128xf32>
    %cst_9 = arith.constant dense<0.000000e+00> : vector<128xf32>
    %22 = vector.multi_reduction <add>, %21, %cst_9 [0] : vector<16x128xf32> to vector<128xf32>
    %23 = vector.shape_cast %22 : vector<128xf32> to vector<1x128xf32>
    %c0_10 = arith.constant 0 : index
    %c0_11 = arith.constant 0 : index
    %24 = vector.load %arg2[%c0_10, %c0_11] : memref<1x128xf32, #tpu.memory_space<vmem>>, vector<1x128xf32>
    tpu.vector_store %arg2[%c0_10, %c0_11], %23 {strides = array<i32>} : memref<1x128xf32, #tpu.memory_space<vmem>>, vector<1x128xf32>,
    return
  }
}

</mosaic_0001>

<bundles_post_ra>
// kernel: smooth_l1_loss_pallas.1
= control target key start
LH: loop header
LB: loop body
LE: loop exit
PB: predicated region body
PF: predicated region fallthrough
CT: control target
= control target key end

     0   :  { %s89_s0 = inlined_call_operand.vmem [shape: f32[16,128], index: 0, kind: input, shape index: {}]   ;;  %s90_s1 = inlined_call_operand.vmem [shape: f32[16,128], index: 1, kind: input, shape index: {}]   ;;  %s91_s2 = inlined_call_operand.vmem [shape: f32[1,128], index: 2, kind: output, shape index: {}]  }
   0x1   :  { %v11_v0 = vld [vmem:[%s89_s0] sm:$0xff]  ;;  %v12_v1 = vld [vmem:[%s89_s0 + $0x8] sm:$0xff] }
   0x2   :  { %v13_v2 = vld [vmem:[%s90_s1] sm:$0xff]  ;;  %v14_v3 = vld [vmem:[%s90_s1 + $0x8] sm:$0xff] }
   0x3   :  { %v15_v4 = vsub.f32 %v11_v0, %v13_v2  ;;  %v16_v5 = vsub.f32 %v12_v1, %v14_v3 }
   0x5   :  { %v17_v6 = vand.u32 2147483647, %v15_v4  ;;  %v18_v7 = vand.u32 2147483647, %v16_v5 }
   0x7   :  { %v19_v8 = vmul.f32 19.085537, %v17_v6  ;;  %v20_v9 = vmul.f32 19.085537, %v18_v7  ;;  %v35_v13 = vmul.f32 1.5, %v17_v6  ;;  %v36_v16 = vmul.f32 1.5, %v18_v7 }
   0x8   :  { %v31_v19 = vmul.f32 0.5, %v17_v6  ;;  %v32_v21 = vmul.f32 0.5, %v18_v7  ;;  %vm39_vm0 = vcmp.lt.f32.partialorder %v17_v6, 1.0  ;;  %vm40_vm1 = vcmp.lt.f32.partialorder %v18_v7, 1.0 }
   0x9   :  { %v21_v10 = vadd.f32 1.0, %v19_v8  ;;  %v22_v11 = vadd.f32 1.0, %v20_v9  ;;  %v37_v23 = vadd.f32 -0.42140645, %v35_v13  ;;  %v38_v25 = vadd.f32 -0.42140645, %v36_v16 }
   0xb   :  { %55 = vlog2.f32 %v21_v10  ;;  %v23_v12 = vmul.f32 0.026197849, %v21_v10  ;;  %v24_v15 = vmul.f32 0.026197849, %v22_v11 }
   0xc   :  { %57 = vlog2.f32 %v22_v11 }
  0x11   :  { %v56_v14 = vpop.eup %55 }
  0x12   :  { %v58_v17 = vpop.eup %57  ;;  %v26_v18 = vmul.f32 0.6931472, %v56_v14 }
  0x13   :  { %v28_v20 = vmul.f32 0.6931472, %v58_v17 }
  0x14   :  { %v29_v22 = vmul.f32 %v26_v18, %v23_v12 }
  0x15   :  { %v30_v24 = vmul.f32 %v28_v20, %v24_v15 }
  0x16   :  { %v33_v26 = vsub.f32 %v29_v22, %v31_v19 }
  0x17   :  { %v34_v27 = vsub.f32 %v30_v24, %v32_v21 }
  0x18   :  { %v41_v28 = vsel %vm39_vm0, %v33_v26, %v37_v23 }
  0x19   :  { %v42_v29 = vsel %vm40_vm1, %v34_v27, %v38_v25 }
  0x1a   :  { %v43_v30 = vadd.f32 %v42_v29, %v41_v28 }
  0x1c   :  { %v44_v31 = vrot.slane %v43_v30, 4 }
  0x1e   :  { %v45_v32 = vadd.f32 %v44_v31, %v43_v30 }
  0x20   :  { %v46_v33 = vrot.slane %v45_v32, 2 }
  0x22   :  { %v47_v34 = vadd.f32 %v46_v33, %v45_v32 }
  0x24   :  { %v48_v35 = vrot.slane %v47_v34, 1 }
  0x26   :  { %v49_v36 = vadd.f32 %v48_v35, %v47_v34 }
  0x28   :  { %50 = vst [vmem:[%s91_s2] sm:$0x1] %v49_v36 }

</bundles_post_ra>
